<compile_context>
chip_gen: v7x
topology: tpu7x:2x2x1
jax: 0.10.0
libtpu: 0.0.40
codegen_flags: <defaults>
</compile_context>

<pallas_src>
import math
import numpy as np
import jax
import jax.numpy as jnp
from jax import lax
from jax.experimental import pallas as pl
from jax.experimental.pallas import tpu as pltpu

# ---- small Llama3-like config ----
B = 2            # batch
S = 8            # seq length
H = 64           # hidden_size
N_HEADS = 4      # num_attention_heads
N_KV = 2         # num_key_value_heads
HEAD_DIM = H // N_HEADS          # 16
N_REP = N_HEADS // N_KV          # GQA repeat factor
INTER = 128      # intermediate_size
EPS = 1e-6       # rms_norm_eps
ROPE_THETA = 10000.0

QDIM = N_HEADS * HEAD_DIM        # 64
KDIM = N_KV * HEAD_DIM           # 32
BS = B * S                       # rows after folding batch into sublanes (16)

# column offsets inside the fused QKV(+rot) projection output
_OQ, _OQR, _OK, _OKR, _OV = 0, QDIM, 2 * QDIM, 2 * QDIM + KDIM, 2 * QDIM + 2 * KDIM
ROT_W = 2 * QDIM + 2 * KDIM      # 192 : [q | q@R | k | k@R] block width
QKV_W = ROT_W + KDIM             # 224 : + [v]


def _decoder_kernel(x_ref, mask_ref, cs_ref, wqkv_ref, wo_ref, wgu_ref, wd_ref,
                    g_ref, out_ref):
    x = x_ref[...].astype(jnp.float32)                            # (BS, H)

    # ---- input_layernorm (RMSNorm, scalar gamma from SMEM) ----
    h = x * lax.rsqrt(jnp.mean(x * x, axis=-1, keepdims=True) + EPS) * g_ref[0]

    # ---- fused QKV (+ pre-rotated, pre-scaled Q / pre-rotated K): one matmul ----
    qkv = jnp.dot(h.astype(jnp.bfloat16), wqkv_ref[...],
                  preferred_element_type=jnp.float32)             # (BS, 224)

    # ---- RoPE: out = q*cos + (q@R)*sin ; q@R folded into the packed weights,
    #      so only elementwise multiplies with the packed cos/sin table remain.
    rot = qkv[:, :ROT_W] * cs_ref[...]                            # (BS, 192)
    q = rot[:, _OQ:_OQ + QDIM] + rot[:, _OQR:_OQR + QDIM]         # (BS, QDIM), pre-scaled
    k = rot[:, _OK:_OK + KDIM] + rot[:, _OKR:_OKR + KDIM]         # (BS, KDIM)
    v = qkv[:, _OV:_OV + KDIM]                                    # (BS, KDIM)

    mask = mask_ref[...]                                          # (BS, BS) block-diag causal
    q_bf = q.astype(jnp.bfloat16)                                 # 1/sqrt(hd) already folded
    k_bf = k.astype(jnp.bfloat16)
    v_bf = v.astype(jnp.bfloat16)

    heads = []
    for hh in range(N_HEADS):                                     # static unroll (4 heads)
        kv = hh // N_REP                                          # GQA repeat_kv mapping
        qh = q_bf[:, hh * HEAD_DIM:(hh + 1) * HEAD_DIM]
        kh = k_bf[:, kv * HEAD_DIM:(kv + 1) * HEAD_DIM]
        vh = v_bf[:, kv * HEAD_DIM:(kv + 1) * HEAD_DIM]
        s = lax.dot_general(qh, kh, (((1,), (1,)), ((), ())),
                            preferred_element_type=jnp.float32) + mask
        s = s - jnp.max(s, axis=-1, keepdims=True)                # f32 softmax
        p = jnp.exp(s)
        p = p * pl.reciprocal(jnp.sum(p, axis=-1, keepdims=True), approx=True)
        heads.append(jnp.dot(p.astype(jnp.bfloat16), vh,
                             preferred_element_type=jnp.float32)) # (BS, hd)

    # single o_proj matmul over the concatenated head outputs
    attn = jnp.dot(jnp.concatenate(heads, axis=-1).astype(jnp.bfloat16),
                   wo_ref[...], preferred_element_type=jnp.float32)  # (BS, H)

    # ---- residual add.  Faithful to the reference: attention output was
    #      assigned to `hidden_size`, so the residual adds RMSNorm1(x). ----
    h1 = x + h

    # ---- post_attention_layernorm ----
    h2 = h1 * lax.rsqrt(jnp.mean(h1 * h1, axis=-1, keepdims=True) + EPS) * g_ref[1]

    # ---- MLP with fused gate|up projection ----
    gu = jnp.dot(h2.astype(jnp.bfloat16), wgu_ref[...],
                 preferred_element_type=jnp.float32)              # (BS, 2*INTER)
    gate = gu[:, :INTER]
    up = gu[:, INTER:]
    act = gate * jax.nn.sigmoid(gate)                             # SiLU (f32)
    mlp = jnp.dot((act * up).astype(jnp.bfloat16), wd_ref[...],
                  preferred_element_type=jnp.float32)             # (BS, H)

    # lane-dense (BS, 2H) = (16, 128) store: [layer_out | o_proj(attention)]
    out_ref[...] = jnp.concatenate([h1 + mlp, attn], axis=-1)


def _rot_weights(w):
    """Columns of (w @ R) for the RoPE pair-rotation R: col 2j = -w[:,2j+1],
    col 2j+1 = w[:,2j].  Exact signed column permutation (no matmul)."""
    n = w.shape[1]
    perm = np.arange(n) ^ 1
    signs = jnp.asarray(np.where(np.arange(n) % 2 == 0, -1.0, 1.0).astype(np.float32))
    return w[:, perm] * signs


def pack_inputs(params, attention_mask, cos, sin):
    """One-time packing of everything that does not depend on `x`:
    RoPE fold + attention scale fold + projection fusion + bf16 cast,
    block-diagonal additive mask, packed cos/sin table."""
    scale = 1.0 / math.sqrt(HEAD_DIM)
    wq = params["wq"] * scale                                     # fold 1/sqrt(hd) into Q
    wk, wv = params["wk"], params["wv"]
    wqkv = jnp.concatenate([wq, _rot_weights(wq), wk, _rot_weights(wk), wv],
                           axis=1)                                # (H, 224)
    wgu = jnp.concatenate([params["wg"], params["wu"]], axis=1)   # (H, 2*INTER)
    gammas = jnp.concatenate([params["g1"].reshape(-1),
                              params["g2"].reshape(-1)]).astype(jnp.float32)  # (2,)

    # batch folded into rows -> block-diagonal additive mask
    rows = jnp.arange(BS) // S
    same_batch = rows[:, None] == rows[None, :]
    big_mask = jnp.where(same_batch, jnp.tile(attention_mask, (B, B)),
                         jnp.float32(-1e9)).astype(jnp.float32)   # (BS, BS)

    # packed cos/sin table [cosq | sinq | cosk | sink], tiled over batch rows
    cos_full = jnp.repeat(cos, 2, axis=-1)                        # (S, HEAD_DIM)
    sin_full = jnp.repeat(sin, 2, axis=-1)
    cs = jnp.concatenate([jnp.tile(cos_full, (1, N_HEADS)),
                          jnp.tile(sin_full, (1, N_HEADS)),
                          jnp.tile(cos_full, (1, N_KV)),
                          jnp.tile(sin_full, (1, N_KV))], axis=-1)  # (S, 192)
    cs = jnp.tile(cs, (B, 1)).astype(jnp.float32)                 # (BS, 192)

    # bf16 weights halve the weight DMA and feed the MXU at native bf16 rate;
    # accumulation stays f32 (preferred_element_type), elementwise math stays f32.
    return (wqkv.astype(jnp.bfloat16), params["wo"].astype(jnp.bfloat16),
            wgu.astype(jnp.bfloat16), params["wd"].astype(jnp.bfloat16),
            gammas, big_mask, cs)


@jax.jit
def llama_decoder_layer(x, packed):
    """x: (B,S,H) f32; packed: output of pack_inputs().

    Returns (hidden_states (B,S,H), o_proj(attention) (B,S,H)).  The module's
    return (output_attentions=False, use_cache=False) is just the first."""
    wqkv, wo, wgu, wd, gammas, big_mask, cs = packed
    x2 = x.reshape(BS, H)                                         # batch -> sublanes

    def vmem():
        return pl.BlockSpec(memory_space=pltpu.MemorySpace.VMEM)

    # Single invocation (no grid): B*S = 16 rows fit one call; a per-batch grid
    # would only add per-step overhead and re-issue constant weight DMAs.
    # TODO(synk): at real Llama sizes add a ("parallel",...) row-tiled grid
    #             (2 TCs on v7x) and K/N-tiled weight blocks sized for 64 MiB VMEM.
    packed_out = pl.pallas_call(
        _decoder_kernel,
        out_shape=jax.ShapeDtypeStruct((BS, 2 * H), jnp.float32),
        in_specs=[vmem(), vmem(), vmem(), vmem(), vmem(), vmem(), vmem(),
                  pl.BlockSpec(memory_space=pltpu.MemorySpace.SMEM)],
        out_specs=vmem(),
    )(x2, big_mask, cs, wqkv, wo, wgu, wd, gammas)

    out = packed_out[:, :H].reshape(B, S, H)
    attn = packed_out[:, H:].reshape(B, S, H)
    return out, attn


def _ref_decoder(x, mask, freqs_cis, p):
    """Pure-JAX f32 mirror of the PyTorch reference (for self-check)."""
    with jax.default_matmul_precision("highest"):
        def rms(v, g):
            return v * lax.rsqrt(jnp.mean(v * v, axis=-1, keepdims=True) + EPS) * g

        h = rms(x, p["g1"][0, 0])
        q = h @ p["wq"]
        k = h @ p["wk"]
        v = h @ p["wv"]
        q = q.reshape(B, S, N_HEADS, HEAD_DIM)
        k = k.reshape(B, S, N_KV, HEAD_DIM)
        v = v.reshape(B, S, N_KV, HEAD_DIM)

        def rope(t):
            tc = t.reshape(*t.shape[:-1], -1, 2)
            tc = tc[..., 0] + 1j * tc[..., 1]
            tr = tc * freqs_cis[None, :, None, :]
            return jnp.stack([tr.real, tr.imag], axis=-1).reshape(t.shape)

        q = rope(q).transpose(0, 2, 1, 3)                         # (B, nH, S, hd)
        k = rope(k).transpose(0, 2, 1, 3)
        v = v.transpose(0, 2, 1, 3)
        k = jnp.repeat(k, N_REP, axis=1)                          # repeat_kv
        v = jnp.repeat(v, N_REP, axis=1)
        aw = jnp.einsum("bhqd,bhkd->bhqk", q, k) / math.sqrt(HEAD_DIM)
        aw = aw + mask[None, None]
        aw = jax.nn.softmax(aw, axis=-1)
        ao = jnp.einsum("bhqk,bhkd->bhqd", aw, v)
        ao = ao.transpose(0, 2, 1, 3).reshape(B, S, -1) @ p["wo"]
        h1 = x + h                                                # reference assigns attn to `hidden_size`
        h2 = rms(h1, p["g2"][0, 0])
        mlp = (jax.nn.silu(h2 @ p["wg"]) * (h2 @ p["wu"])) @ p["wd"]
        return h1 + mlp, ao


if __name__ == "__main__":
    key = jax.random.PRNGKey(0)
    ks = jax.random.split(key, 9)
    x = jax.random.normal(ks[0], (B, S, H), jnp.float32)
    scale = 0.05
    params = {
        "wq": jax.random.normal(ks[1], (H, QDIM), jnp.float32) * scale,
        "wk": jax.random.normal(ks[2], (H, KDIM), jnp.float32) * scale,
        "wv": jax.random.normal(ks[3], (H, KDIM), jnp.float32) * scale,
        "wo": jax.random.normal(ks[4], (QDIM, H), jnp.float32) * scale,
        "wg": jax.random.normal(ks[5], (H, INTER), jnp.float32) * scale,
        "wu": jax.random.normal(ks[6], (H, INTER), jnp.float32) * scale,
        "wd": jax.random.normal(ks[7], (INTER, H), jnp.float32) * scale,
        "g1": jnp.ones((1, 1), jnp.float32),                      # RMSNorm gammas (scalar)
        "g2": jnp.ones((1, 1), jnp.float32),
    }

    # causal additive attention mask, (S, S)
    mask_np = np.where(np.tril(np.ones((S, S), bool)), 0.0, -1e9).astype(np.float32)
    attention_mask = jnp.asarray(mask_np)

    # rotary frequencies (the reference's `position_ids` / freqs_cis)
    pos = np.arange(S, dtype=np.float32)
    inv_freq = 1.0 / (ROPE_THETA ** (np.arange(0, HEAD_DIM, 2, dtype=np.float32) / HEAD_DIM))
    ang = np.outer(pos, inv_freq).astype(np.float32)              # (S, HEAD_DIM//2)
    cos = jnp.asarray(np.cos(ang))
    sin = jnp.asarray(np.sin(ang))

    packed = pack_inputs(params, attention_mask, cos, sin)        # one-time packing
    out, attn = llama_decoder_layer(x, packed)
    jax.block_until_ready(out)
    jax.block_until_ready(attn)

    # self-check against a pure-JAX f32 mirror of the PyTorch reference
    freqs_cis = cos + 1j * sin
    ref_out, ref_attn = _ref_decoder(x, attention_mask, freqs_cis, params)
    np.testing.assert_allclose(np.asarray(out), np.asarray(ref_out), atol=2e-2, rtol=2e-2)
    np.testing.assert_allclose(np.asarray(attn), np.asarray(ref_attn), atol=2e-2, rtol=2e-2)

    print("KERNEL_OK")
</pallas_src>

<mosaic_0001>
module attributes {stable_mosaic.version = 11 : i64} {
  func.func @_decoder_kernel(%arg0: memref<16x64xf32, #tpu.memory_space<vmem>>, %arg1: memref<16x16xf32, #tpu.memory_space<vmem>>, %arg2: memref<16x192xf32, #tpu.memory_space<vmem>>, %arg3: memref<64x224xbf16, #tpu.memory_space<vmem>>, %arg4: memref<64x64xbf16, #tpu.memory_space<vmem>>, %arg5: memref<64x256xbf16, #tpu.memory_space<vmem>>, %arg6: memref<128x64xbf16, #tpu.memory_space<vmem>>, %arg7: memref<2xf32, #tpu.memory_space<smem>>, %arg8: memref<16x128xf32, #tpu.memory_space<vmem>>) attributes {dimension_semantics = [], scalar_prefetch = 0 : i64, scratch_operands = 0 : i64, tpu.core_type = #tpu.core_type<tc>} {
    %c0 = arith.constant 0 : index
    %c0_0 = arith.constant 0 : index
    %0 = vector.load %arg0[%c0, %c0_0] : memref<16x64xf32, #tpu.memory_space<vmem>>, vector<16x64xf32>
    %1 = arith.mulf %0, %0 : vector<16x64xf32>
    %cst = arith.constant dense<0.000000e+00> : vector<16xf32>
    %2 = vector.multi_reduction <add>, %1, %cst [1] : vector<16x64xf32> to vector<16xf32>
    %3 = vector.shape_cast %2 : vector<16xf32> to vector<16x1xf32>
    %cst_1 = arith.constant 6.400000e+01 : f32
    %4 = vector.broadcast %cst_1 : f32 to vector<16x1xf32>
    %5 = arith.divf %3, %4 : vector<16x1xf32>
    %cst_2 = arith.constant 9.99999997E-7 : f32
    %6 = vector.broadcast %cst_2 : f32 to vector<16x1xf32>
    %7 = arith.addf %5, %6 : vector<16x1xf32>
    %8 = math.rsqrt %7 : vector<16x1xf32>
    %9 = vector.broadcast %8 : vector<16x1xf32> to vector<16x64xf32>
    %10 = arith.mulf %0, %9 : vector<16x64xf32>
    %c0_3 = arith.constant 0 : index
    %11 = memref.load %arg7[%c0_3] : memref<2xf32, #tpu.memory_space<smem>>
    %12 = vector.broadcast %11 : f32 to vector<16x64xf32>
    %13 = arith.mulf %10, %12 : vector<16x64xf32>
    %14 = arith.truncf %13 : vector<16x64xf32> to vector<16x64xbf16>
    %c0_4 = arith.constant 0 : index
    %c0_5 = arith.constant 0 : index
    %15 = vector.load %arg3[%c0_4, %c0_5] : memref<64x224xbf16, #tpu.memory_space<vmem>>, vector<64x224xbf16>
    %cst_6 = arith.constant dense<0.000000e+00> : vector<16x224xf32>
    %16 = tpu.matmul %14, %15, %cst_6 {dimension_numbers = #tpu.dot_dimension_numbers<[1], [0], [0], [1], [0, 0, 1, 1], [], []>} : vector<16x64xbf16>, vector<64x224xbf16>, vector<16x224xf32> -> vector<16x224xf32>
    %17 = vector.extract_strided_slice %16 {offsets = [0, 0], sizes = [16, 192], strides = [1, 1]} : vector<16x224xf32> to vector<16x192xf32>
    %c0_7 = arith.constant 0 : index
    %c0_8 = arith.constant 0 : index
    %18 = vector.load %arg2[%c0_7, %c0_8] : memref<16x192xf32, #tpu.memory_space<vmem>>, vector<16x192xf32>
    %19 = arith.mulf %17, %18 : vector<16x192xf32>
    %20 = vector.extract_strided_slice %19 {offsets = [0, 0], sizes = [16, 64], strides = [1, 1]} : vector<16x192xf32> to vector<16x64xf32>
    %21 = vector.extract_strided_slice %19 {offsets = [0, 64], sizes = [16, 64], strides = [1, 1]} : vector<16x192xf32> to vector<16x64xf32>
    %22 = arith.addf %20, %21 : vector<16x64xf32>
    %23 = vector.extract_strided_slice %19 {offsets = [0, 128], sizes = [16, 32], strides = [1, 1]} : vector<16x192xf32> to vector<16x32xf32>
    %24 = vector.extract_strided_slice %19 {offsets = [0, 160], sizes = [16, 32], strides = [1, 1]} : vector<16x192xf32> to vector<16x32xf32>
    %25 = arith.addf %23, %24 : vector<16x32xf32>
    %26 = vector.extract_strided_slice %16 {offsets = [0, 192], sizes = [16, 32], strides = [1, 1]} : vector<16x224xf32> to vector<16x32xf32>
    %c0_9 = arith.constant 0 : index
    %c0_10 = arith.constant 0 : index
    %27 = vector.load %arg1[%c0_9, %c0_10] : memref<16x16xf32, #tpu.memory_space<vmem>>, vector<16x16xf32>
    %28 = arith.truncf %22 : vector<16x64xf32> to vector<16x64xbf16>
    %29 = arith.truncf %25 : vector<16x32xf32> to vector<16x32xbf16>
    %30 = arith.truncf %26 : vector<16x32xf32> to vector<16x32xbf16>
    %31 = vector.extract_strided_slice %28 {offsets = [0, 0], sizes = [16, 16], strides = [1, 1]} : vector<16x64xbf16> to vector<16x16xbf16>
    %32 = vector.extract_strided_slice %29 {offsets = [0, 0], sizes = [16, 16], strides = [1, 1]} : vector<16x32xbf16> to vector<16x16xbf16>
    %33 = vector.extract_strided_slice %30 {offsets = [0, 0], sizes = [16, 16], strides = [1, 1]} : vector<16x32xbf16> to vector<16x16xbf16>
    %cst_11 = arith.constant dense<0.000000e+00> : vector<16x16xf32>
    %34 = tpu.matmul %31, %32, %cst_11 {dimension_numbers = #tpu.dot_dimension_numbers<[1], [1], [0], [0], [0, 0, 1, 0], [], []>} : vector<16x16xbf16>, vector<16x16xbf16>, vector<16x16xf32> -> vector<16x16xf32>
    %35 = arith.addf %34, %27 : vector<16x16xf32>
    %cst_12 = arith.constant dense<0xFF800000> : vector<16xf32>
    %36 = vector.multi_reduction <maximumf>, %35, %cst_12 [1] : vector<16x16xf32> to vector<16xf32>
    %37 = vector.shape_cast %36 : vector<16xf32> to vector<16x1xf32>
    %38 = vector.broadcast %37 : vector<16x1xf32> to vector<16x16xf32>
    %39 = arith.subf %35, %38 : vector<16x16xf32>
    %40 = math.exp %39 : vector<16x16xf32>
    %cst_13 = arith.constant dense<0.000000e+00> : vector<16xf32>
    %41 = vector.multi_reduction <add>, %40, %cst_13 [1] : vector<16x16xf32> to vector<16xf32>
    %42 = vector.shape_cast %41 : vector<16xf32> to vector<16x1xf32>
    %43 = tpu.reciprocal %42 {approx = true} : vector<16x1xf32> -> vector<16x1xf32>
    %44 = vector.broadcast %43 : vector<16x1xf32> to vector<16x16xf32>
    %45 = arith.mulf %40, %44 : vector<16x16xf32>
    %46 = arith.truncf %45 : vector<16x16xf32> to vector<16x16xbf16>
    %cst_14 = arith.constant dense<0.000000e+00> : vector<16x16xf32>
    %47 = tpu.matmul %46, %33, %cst_14 {dimension_numbers = #tpu.dot_dimension_numbers<[1], [0], [0], [1], [0, 0, 1, 1], [], []>} : vector<16x16xbf16>, vector<16x16xbf16>, vector<16x16xf32> -> vector<16x16xf32>
    %48 = vector.extract_strided_slice %28 {offsets = [0, 16], sizes = [16, 16], strides = [1, 1]} : vector<16x64xbf16> to vector<16x16xbf16>
    %49 = vector.extract_strided_slice %29 {offsets = [0, 0], sizes = [16, 16], strides = [1, 1]} : vector<16x32xbf16> to vector<16x16xbf16>
    %50 = vector.extract_strided_slice %30 {offsets = [0, 0], sizes = [16, 16], strides = [1, 1]} : vector<16x32xbf16> to vector<16x16xbf16>
    %cst_15 = arith.constant dense<0.000000e+00> : vector<16x16xf32>
    %51 = tpu.matmul %48, %49, %cst_15 {dimension_numbers = #tpu.dot_dimension_numbers<[1], [1], [0], [0], [0, 0, 1, 0], [], []>} : vector<16x16xbf16>, vector<16x16xbf16>, vector<16x16xf32> -> vector<16x16xf32>
    %52 = arith.addf %51, %27 : vector<16x16xf32>
    %cst_16 = arith.constant dense<0xFF800000> : vector<16xf32>
    %53 = vector.multi_reduction <maximumf>, %52, %cst_16 [1] : vector<16x16xf32> to vector<16xf32>
    %54 = vector.shape_cast %53 : vector<16xf32> to vector<16x1xf32>
    %55 = vector.broadcast %54 : vector<16x1xf32> to vector<16x16xf32>
    %56 = arith.subf %52, %55 : vector<16x16xf32>
    %57 = math.exp %56 : vector<16x16xf32>
    %cst_17 = arith.constant dense<0.000000e+00> : vector<16xf32>
    %58 = vector.multi_reduction <add>, %57, %cst_17 [1] : vector<16x16xf32> to vector<16xf32>
    %59 = vector.shape_cast %58 : vector<16xf32> to vector<16x1xf32>
    %60 = tpu.reciprocal %59 {approx = true} : vector<16x1xf32> -> vector<16x1xf32>
    %61 = vector.broadcast %60 : vector<16x1xf32> to vector<16x16xf32>
    %62 = arith.mulf %57, %61 : vector<16x16xf32>
    %63 = arith.truncf %62 : vector<16x16xf32> to vector<16x16xbf16>
    %cst_18 = arith.constant dense<0.000000e+00> : vector<16x16xf32>
    %64 = tpu.matmul %63, %50, %cst_18 {dimension_numbers = #tpu.dot_dimension_numbers<[1], [0], [0], [1], [0, 0, 1, 1], [], []>} : vector<16x16xbf16>, vector<16x16xbf16>, vector<16x16xf32> -> vector<16x16xf32>
    %65 = vector.extract_strided_slice %28 {offsets = [0, 32], sizes = [16, 16], strides = [1, 1]} : vector<16x64xbf16> to vector<16x16xbf16>
    %66 = vector.extract_strided_slice %29 {offsets = [0, 16], sizes = [16, 16], strides = [1, 1]} : vector<16x32xbf16> to vector<16x16xbf16>
    %67 = vector.extract_strided_slice %30 {offsets = [0, 16], sizes = [16, 16], strides = [1, 1]} : vector<16x32xbf16> to vector<16x16xbf16>
    %cst_19 = arith.constant dense<0.000000e+00> : vector<16x16xf32>
    %68 = tpu.matmul %65, %66, %cst_19 {dimension_numbers = #tpu.dot_dimension_numbers<[1], [1], [0], [0], [0, 0, 1, 0], [], []>} : vector<16x16xbf16>, vector<16x16xbf16>, vector<16x16xf32> -> vector<16x16xf32>
    %69 = arith.addf %68, %27 : vector<16x16xf32>
    %cst_20 = arith.constant dense<0xFF800000> : vector<16xf32>
    %70 = vector.multi_reduction <maximumf>, %69, %cst_20 [1] : vector<16x16xf32> to vector<16xf32>
    %71 = vector.shape_cast %70 : vector<16xf32> to vector<16x1xf32>
    %72 = vector.broadcast %71 : vector<16x1xf32> to vector<16x16xf32>
    %73 = arith.subf %69, %72 : vector<16x16xf32>
    %74 = math.exp %73 : vector<16x16xf32>
    %cst_21 = arith.constant dense<0.000000e+00> : vector<16xf32>
    %75 = vector.multi_reduction <add>, %74, %cst_21 [1] : vector<16x16xf32> to vector<16xf32>
    %76 = vector.shape_cast %75 : vector<16xf32> to vector<16x1xf32>
    %77 = tpu.reciprocal %76 {approx = true} : vector<16x1xf32> -> vector<16x1xf32>
    %78 = vector.broadcast %77 : vector<16x1xf32> to vector<16x16xf32>
    %79 = arith.mulf %74, %78 : vector<16x16xf32>
    %80 = arith.truncf %79 : vector<16x16xf32> to vector<16x16xbf16>
    %cst_22 = arith.constant dense<0.000000e+00> : vector<16x16xf32>
    %81 = tpu.matmul %80, %67, %cst_22 {dimension_numbers = #tpu.dot_dimension_numbers<[1], [0], [0], [1], [0, 0, 1, 1], [], []>} : vector<16x16xbf16>, vector<16x16xbf16>, vector<16x16xf32> -> vector<16x16xf32>
    %82 = vector.extract_strided_slice %28 {offsets = [0, 48], sizes = [16, 16], strides = [1, 1]} : vector<16x64xbf16> to vector<16x16xbf16>
    %83 = vector.extract_strided_slice %29 {offsets = [0, 16], sizes = [16, 16], strides = [1, 1]} : vector<16x32xbf16> to vector<16x16xbf16>
    %84 = vector.extract_strided_slice %30 {offsets = [0, 16], sizes = [16, 16], strides = [1, 1]} : vector<16x32xbf16> to vector<16x16xbf16>
    %cst_23 = arith.constant dense<0.000000e+00> : vector<16x16xf32>
    %85 = tpu.matmul %82, %83, %cst_23 {dimension_numbers = #tpu.dot_dimension_numbers<[1], [1], [0], [0], [0, 0, 1, 0], [], []>} : vector<16x16xbf16>, vector<16x16xbf16>, vector<16x16xf32> -> vector<16x16xf32>
    %86 = arith.addf %85, %27 : vector<16x16xf32>
    %cst_24 = arith.constant dense<0xFF800000> : vector<16xf32>
    %87 = vector.multi_reduction <maximumf>, %86, %cst_24 [1] : vector<16x16xf32> to vector<16xf32>
    %88 = vector.shape_cast %87 : vector<16xf32> to vector<16x1xf32>
    %89 = vector.broadcast %88 : vector<16x1xf32> to vector<16x16xf32>
    %90 = arith.subf %86, %89 : vector<16x16xf32>
    %91 = math.exp %90 : vector<16x16xf32>
    %cst_25 = arith.constant dense<0.000000e+00> : vector<16xf32>
    %92 = vector.multi_reduction <add>, %91, %cst_25 [1] : vector<16x16xf32> to vector<16xf32>
    %93 = vector.shape_cast %92 : vector<16xf32> to vector<16x1xf32>
    %94 = tpu.reciprocal %93 {approx = true} : vector<16x1xf32> -> vector<16x1xf32>
    %95 = vector.broadcast %94 : vector<16x1xf32> to vector<16x16xf32>
    %96 = arith.mulf %91, %95 : vector<16x16xf32>
    %97 = arith.truncf %96 : vector<16x16xf32> to vector<16x16xbf16>
    %cst_26 = arith.constant dense<0.000000e+00> : vector<16x16xf32>
    %98 = tpu.matmul %97, %84, %cst_26 {dimension_numbers = #tpu.dot_dimension_numbers<[1], [0], [0], [1], [0, 0, 1, 1], [], []>} : vector<16x16xbf16>, vector<16x16xbf16>, vector<16x16xf32> -> vector<16x16xf32>
    %99 = tpu.concatenate %47, %64, %81, %98 in 1 : vector<16x16xf32>, vector<16x16xf32>, vector<16x16xf32>, vector<16x16xf32> -> vector<16x64xf32>
    %100 = arith.truncf %99 : vector<16x64xf32> to vector<16x64xbf16>
    %c0_27 = arith.constant 0 : index
    %c0_28 = arith.constant 0 : index
    %101 = vector.load %arg4[%c0_27, %c0_28] : memref<64x64xbf16, #tpu.memory_space<vmem>>, vector<64x64xbf16>
    %cst_29 = arith.constant dense<0.000000e+00> : vector<16x64xf32>
    %102 = tpu.matmul %100, %101, %cst_29 {dimension_numbers = #tpu.dot_dimension_numbers<[1], [0], [0], [1], [0, 0, 1, 1], [], []>} : vector<16x64xbf16>, vector<64x64xbf16>, vector<16x64xf32> -> vector<16x64xf32>
    %103 = arith.addf %0, %13 : vector<16x64xf32>
    %104 = arith.mulf %103, %103 : vector<16x64xf32>
    %cst_30 = arith.constant dense<0.000000e+00> : vector<16xf32>
    %105 = vector.multi_reduction <add>, %104, %cst_30 [1] : vector<16x64xf32> to vector<16xf32>
    %106 = vector.shape_cast %105 : vector<16xf32> to vector<16x1xf32>
    %cst_31 = arith.constant 6.400000e+01 : f32
    %107 = vector.broadcast %cst_31 : f32 to vector<16x1xf32>
    %108 = arith.divf %106, %107 : vector<16x1xf32>
    %cst_32 = arith.constant 9.99999997E-7 : f32
    %109 = vector.broadcast %cst_32 : f32 to vector<16x1xf32>
    %110 = arith.addf %108, %109 : vector<16x1xf32>
    %111 = math.rsqrt %110 : vector<16x1xf32>
    %112 = vector.broadcast %111 : vector<16x1xf32> to vector<16x64xf32>
    %113 = arith.mulf %103, %112 : vector<16x64xf32>
    %c1 = arith.constant 1 : index
    %114 = memref.load %arg7[%c1] : memref<2xf32, #tpu.memory_space<smem>>
    %115 = vector.broadcast %114 : f32 to vector<16x64xf32>
    %116 = arith.mulf %113, %115 : vector<16x64xf32>
    %117 = arith.truncf %116 : vector<16x64xf32> to vector<16x64xbf16>
    %c0_33 = arith.constant 0 : index
    %c0_34 = arith.constant 0 : index
    %118 = vector.load %arg5[%c0_33, %c0_34] : memref<64x256xbf16, #tpu.memory_space<vmem>>, vector<64x256xbf16>
    %cst_35 = arith.constant dense<0.000000e+00> : vector<16x256xf32>
    %119 = tpu.matmul %117, %118, %cst_35 {dimension_numbers = #tpu.dot_dimension_numbers<[1], [0], [0], [1], [0, 0, 1, 1], [], []>} : vector<16x64xbf16>, vector<64x256xbf16>, vector<16x256xf32> -> vector<16x256xf32>
    %120 = vector.extract_strided_slice %119 {offsets = [0, 0], sizes = [16, 128], strides = [1, 1]} : vector<16x256xf32> to vector<16x128xf32>
    %121 = vector.extract_strided_slice %119 {offsets = [0, 128], sizes = [16, 128], strides = [1, 1]} : vector<16x256xf32> to vector<16x128xf32>
    %122 = arith.negf %120 : vector<16x128xf32>
    %123 = math.exp %122 : vector<16x128xf32>
    %cst_36 = arith.constant 1.000000e+00 : f32
    %124 = vector.broadcast %cst_36 : f32 to vector<16x128xf32>
    %125 = arith.addf %124, %123 : vector<16x128xf32>
    %126 = arith.divf %124, %125 : vector<16x128xf32>
    %127 = arith.mulf %120, %126 : vector<16x128xf32>
    %128 = arith.mulf %127, %121 : vector<16x128xf32>
    %129 = arith.truncf %128 : vector<16x128xf32> to vector<16x128xbf16>
    %c0_37 = arith.constant 0 : index
    %c0_38 = arith.constant 0 : index
    %130 = vector.load %arg6[%c0_37, %c0_38] : memref<128x64xbf16, #tpu.memory_space<vmem>>, vector<128x64xbf16>
    %cst_39 = arith.constant dense<0.000000e+00> : vector<16x64xf32>
    %131 = tpu.matmul %129, %130, %cst_39 {dimension_numbers = #tpu.dot_dimension_numbers<[1], [0], [0], [1], [0, 0, 1, 1], [], []>} : vector<16x128xbf16>, vector<128x64xbf16>, vector<16x64xf32> -> vector<16x64xf32>
    %132 = arith.addf %103, %131 : vector<16x64xf32>
    %133 = tpu.concatenate %132, %102 in 1 : vector<16x64xf32>, vector<16x64xf32> -> vector<16x128xf32>
    %c0_40 = arith.constant 0 : index
    %c0_41 = arith.constant 0 : index
    %134 = vector.load %arg8[%c0_40, %c0_41] : memref<16x128xf32, #tpu.memory_space<vmem>>, vector<16x128xf32>
    tpu.vector_store %arg8[%c0_40, %c0_41], %133 {strides = array<i32>} : memref<16x128xf32, #tpu.memory_space<vmem>>, vector<16x128xf32>,
    return
  }
}

</mosaic_0001>

<bundles_post_ra>
// kernel: llama_decoder_layer.1
= control target key start
LH: loop header
LB: loop body
LE: loop exit
PB: predicated region body
PF: predicated region fallthrough
CT: control target
= control target key end

     0   :  { %13 = vsyncpa [#allocation3], 0  ;;  %s1756_s0 = inlined_call_operand.hbm [shape: f32[16,64], index: 0, kind: input, shape index: {}]   ;;  %s1757_s1 = inlined_call_operand.vmem [shape: f32[16,16], index: 1, kind: input, shape index: {}]   ;;  %s1758_s2 = inlined_call_operand.vmem [shape: f32[16,192], index: 2, kind: input, shape index: {}]   ;;  %s1759_s3 = inlined_call_operand.vmem [shape: bf16[64,224], index: 3, kind: input, shape index: {}]   ;;  %s1760_s4 = inlined_call_operand.hbm [shape: bf16[64,64], index: 4, kind: input, shape index: {}]   ;;  %s1761_s5 = inlined_call_operand.hbm [shape: bf16[64,256], index: 5, kind: input, shape index: {}]   ;;  %s1762_s6 = inlined_call_operand.vmem [shape: bf16[128,64], index: 6, kind: input, shape index: {}]   ;;  %s1763_s7 = inlined_call_operand.vmem [shape: f32[2], index: 7, kind: input, shape index: {}]   ;;  %s1764_s8 = inlined_call_operand.vmem [shape: f32[16,128], index: 8, kind: output, shape index: {}]  }
   0x1   :  { %14 = vsyncpa [#allocation6], 0 }
   0x2   :  { %15 = vsyncpa [#allocation4], 0  ;;  %s1425_s27 = smov [#allocation5]   ;;  %s1341_s9 = scalar_lea.hbm %s1760_s4, 512 }
   0x3   :  { %s39_s28 = sshll.u32 %s1425_s27, 4  ;;  %p1342_p0 = scmp.ne.s32.totalorder %s1760_s4, %s1341_s9  ;;  %s40_s28 = int_to_ptr.vmem [resolvable:$true] %s39_s28 }
   0x4   :  { %p1345_p1 = scmp.lt.u32.totalorder %s1341_s9, %s1760_s4 }
   0x6   :  { %p1347_p2 = pnand %p1345_p1, %p1342_p0 }
   0x8   :  { %1350 = shalt.err (!%p1347_p2)
}
   0x9   :  { %s1351_s14 = scalar_lea.vmem %s40_s28, 512  ;;  %p1356_p4 = scmp.lt.s32.totalorder %s40_s28, %s40_s28 }
   0xa   :  { %p1352_p3 = scmp.ne.s32.totalorder %s40_s28, %s1351_s14  ;;  %p1357_p5 = scmp.lt.s32.totalorder %s1351_s14, %s1351_s14 }
   0xc   :  { %p1358_p6 = por %p1357_p5, %p1356_p4 }
   0xe   :  { %p1359_p7 = pnand %p1358_p6, %p1352_p3 }
  0x10   :  { %1362 = shalt.err (!%p1359_p7)
}
  0x11   :  { %s1426_s15 = smov 64   ;;  %s1427_s16 = smov 4  }
  0x12   :  { %45 = dma.hbm_to_vmem [thread:$0]  %s1760_s4, 512, %s40_s28, [#allocation6], %s1426_s15, %s1426_s15, %s1427_s16  }
  0x13   :  { %s1428_s19 = smov [#allocation2]   ;;  %s1363_s23 = scalar_lea.hbm %s1756_s0, 256 }
  0x14   :  { %s21_s20 = sshll.u32 %s1428_s19, 4  ;;  %p1364_p8 = scmp.ne.s32.totalorder %s1756_s0, %s1363_s23  ;;  %s22_s20 = int_to_ptr.vmem [resolvable:$true] %s21_s20 }
  0x15   :  { %p1367_p9 = scmp.lt.u32.totalorder %s1363_s23, %s1756_s0 }
  0x17   :  { %p1369_p10 = pnand %p1367_p9, %p1364_p8 }
  0x19   :  { %1372 = shalt.err (!%p1369_p10)
}
  0x1a   :  { %s1373_s29 = scalar_lea.vmem %s22_s20, 256  ;;  %p1378_p12 = scmp.lt.s32.totalorder %s22_s20, %s22_s20 }
  0x1b   :  { %p1374_p11 = scmp.ne.s32.totalorder %s22_s20, %s1373_s29  ;;  %p1379_p13 = scmp.lt.s32.totalorder %s1373_s29, %s1373_s29 }
  0x1d   :  { %p1380_p0 = por %p1379_p13, %p1378_p12 }
  0x1f   :  { %p1381_p1 = pnand %p1380_p0, %p1374_p11 }
  0x21   :  { %1384 = shalt.err (!%p1381_p1)
}
  0x22   :  { %s1429_s4 = smov 128   ;;  %s1430_s28 = smov 8  }
  0x23   :  { %27 = dma.hbm_to_vmem [thread:$0]  %s1756_s0, 256, %s22_s20, [#allocation3], %s1429_s4, %s1429_s4, %s1430_s28  }
  0x24   :  { %s66_s12 = sshll.u32 %s1763_s7, 4  ;;  %s1431_s13 = smov [#allocation7]   ;;  %s67_s12 = int_to_ptr.vmem [resolvable:$true] %s66_s12 }
  0x25   :  { %s51_s14 = sshll.u32 %s1431_s13, 4  ;;  %s1385_s18 = scalar_lea.hbm %s1761_s5, 1024  ;;  %s52_s14 = int_to_ptr.vmem [resolvable:$true] %s51_s14 }
  0x26   :  { %p1386_p2 = scmp.ne.s32.totalorder %s1761_s5, %s1385_s18  ;;  %p1389_p3 = scmp.lt.u32.totalorder %s1385_s18, %s1761_s5 }
  0x28   :  { %p1391_p4 = pnand %p1389_p3, %p1386_p2 }
  0x2a   :  { %1394 = shalt.err (!%p1391_p4)
}
  0x2b   :  { %s1395_s0 = scalar_lea.vmem %s52_s14, 1024  ;;  %p1400_p6 = scmp.lt.s32.totalorder %s52_s14, %s52_s14 }
  0x2c   :  { %p1396_p5 = scmp.ne.s32.totalorder %s52_s14, %s1395_s0  ;;  %p1401_p7 = scmp.lt.s32.totalorder %s1395_s0, %s1395_s0 }
  0x2e   :  { %p1402_p8 = por %p1401_p7, %p1400_p6 }
  0x30   :  { %p1403_p9 = pnand %p1402_p8, %p1396_p5 }
  0x32   :  { %1406 = shalt.err (!%p1403_p9)
}
  0x33   :  { %57 = dma.hbm_to_vmem [thread:$0]  %s1761_s5, 1024, %s52_s14, [#allocation6], %s1429_s4, %s1429_s4, %s1430_s28  }
  0x34   :  { %s1407_s24 = scalar_lea.vmem %s67_s12, 16  ;;  %p1412_p11 = scmp.lt.s32.totalorder %s67_s12, %s67_s12 }
  0x35   :  { %p1408_p10 = scmp.ne.s32.totalorder %s67_s12, %s1407_s24  ;;  %p1413_p12 = scmp.lt.s32.totalorder %s1407_s24, %s1407_s24 }
  0x37   :  { %p1414_p13 = por %p1413_p12, %p1412_p11 }
  0x39   :  { %p1415_p0 = pnand %p1414_p13, %p1408_p10 }
  0x3b   :  { %1418 = shalt.err (!%p1415_p0)
}
  0x3c   :  { %s1432_s25 = smov [#allocation8]  }
  0x3d   :  { %69 = dma.vmem_to_smem %s67_s12, 16, %s1432_s25, [#allocation4]  }
  0x3e   :  { %1419 = dma.done.wait [#allocation3], 256  }
  0x3f   :  { %1420 = vsyncadd [#allocation3], 4294967040 }
  0x40   :  { %1421 = dma.done.wait [#allocation6], 1536  }
  0x41   :  { %1422 = vsyncadd [#allocation6], 4294965760 }
  0x42   :  { %1423 = dma.done.wait [#allocation4], 16  }
  0x43   :  { %1424 = vsyncadd [#allocation4], 4294967280 }
  0x44   :  { %82 = sfence }
  0x45   :  { %v1528_v0 = vld [vmem:[#allocation2] sm:$0xff]  ;;  %vm88_vm0 = vcmask 523264   ;;  %v1530_v1 = vld [vmem:[#allocation2 + $0x8] sm:$0xff]  ;;  %v1260_v8 = vld [vmem:[%s1759_s3 + $0x14] ss:$8 sps:$4 sm:$0xff]   ;;  %v1433_v11 = vmov 0  }
  0x46   :  { %v86_v2 = vmul.f32 %v1528_v0, %v1528_v0  ;;  %v87_v3 = vmul.f32 %v1530_v1, %v1530_v1  ;;  %v1257_v6 = vld [vmem:[%s1759_s3 + $0x4] ss:$8 sps:$4 sm:$0xff]   ;;  %v1259_v7 = vld [vmem:[%s1759_s3] ss:$8 sps:$4 sm:$0xff]   ;;  %v1262_v9 = vld [vmem:[%s1759_s3 + $0x10] ss:$8 sps:$4 sm:$0xff]   ;;  %192 = vmatprep.mubr.bf16.mxu1 %v1433_v11 }
  0x47   :  { %160 = vmatprep.subr.bf16.mxu1 %v1257_v6  ;;  %v1263_v10 = vld [vmem:[%s1759_s3 + $0x24] ss:$8 sps:$4 sm:$0xff]   ;;  %v1265_v12 = vld [vmem:[%s1759_s3 + $0x20] ss:$8 sps:$4 sm:$0xff]   ;;  %v1266_v13 = vld [vmem:[%s1759_s3 + $0x34] ss:$8 sps:$4 sm:$0xff]  }
  0x48   :  { %v89_v4 = vsel %vm88_vm0, %v86_v2, 0.0  ;;  %v92_v5 = vsel %vm88_vm0, %v87_v3, 0.0  ;;  %161 = vmatpush1.bf16.msra.mxu1 %v1259_v7  ;;  %v1268_v14 = vld [vmem:[%s1759_s3 + $0x30] ss:$8 sps:$4 sm:$0xff]   ;;  %s104_s19 = sld [smem:[#allocation8]]  ;;  %v203_v29 = vld [vmem:[%s1758_s2] sm:$0xff] }
  0x49   :  { %90 = vadd.xlane.f32.xlu0 %v89_v4  ;;  %162 = vmatprep.subr.bf16.mxu1 %v1260_v8  ;;  %v204_v30 = vld [vmem:[%s1758_s2 + $0x8] sm:$0xff]  ;;  %v1434_v34 = vmov 0.0   ;;  %v205_v37 = vld [vmem:[%s1758_s2 + $0x10] sm:$0xff]  ;;  %s1435_s20 = smov 96   ;;  %v206_v41 = vld [vmem:[%s1758_s2 + $0x18] sm:$0xff]  ;;  %vm1436_vm1 = vmmov 0  }
  0x4a   :  { %1157 = vmatprep.subr.bf16.mxu0 %v1434_v34  ;;  %1159 = vmatprep.mubr.msk.bf16.mxu0 %vm1436_vm1, %v1434_v34  ;;  %s1437_s2 = smov 112   ;;  %vm236_vm2 = vcmask 130048   ;;  %s1438_s5 = smov 80   ;;  %v231_v59 = vld [vmem:[%s1757_s1] sm:$0xff]  ;;  %v232_v61 = vld [vmem:[%s1757_s1 + $0x8] sm:$0xff]  ;;  %vm730_vm3 = vcmask 261120  }
  0x4b   :  { %s1439_s1 = smov 48   ;;  %s1095_s28 = sld [smem:[#allocation8 + $0x1]]  ;;  %vm733_vm4 = vcmask 392192  }
  0x4c   :  { %163 = vmatpush1.bf16.msra.mxu1 %v1262_v9  ;;  %s1440_s30 = smov 16   ;;  %s1441_s9 = smov 32  }
  0x4d   :  { %93 = vadd.xlane.f32.xlu0 %v92_v5  ;;  %164 = vmatprep.subr.bf16.mxu1 %v1263_v10 }
  0x4e   :  { %v105_v24 = vstv %s104_s19 }
  0x50   :  { %165 = vmatpush1.bf16.msra.mxu1 %v1265_v12 }
  0x51   :  { %166 = vmatprep.subr.bf16.mxu1 %v1266_v13 }
  0x54   :  { %167 = vmatpush1.bf16.msra.mxu1 %v1268_v14 }
  0x55   :  { %1145 = vmatprep.subr.bf16.mxu1 %v1434_v34 }
  0xd6   :  { %v91_v15 = vpop.xlane.xlu0 %90 }
  0xd7   :  { %v96_v16 = vmul.f32 0.015625, %v91_v15 }
  0xd9   :  { %v98_v17 = vadd.f32 1e-06, %v96_v16 }
  0xda   :  { %v94_v18 = vpop.xlane.xlu0 %93 }
  0xdb   :  { %1293 = vrsqrt.f32 %v98_v17  ;;  %v97_v19 = vmul.f32 0.015625, %v94_v18 }
  0xdd   :  { %v99_v20 = vadd.f32 1e-06, %v97_v19 }
  0xdf   :  { %1295 = vrsqrt.f32 %v99_v20 }
  0xe5   :  { %v1294_v21 = vpop.eup %1293 }
  0xe6   :  { %v102_v22 = vmul.f32 %v1294_v21, %v1528_v0 }
  0xe8   :  { %v1565_v26 = vmul.f32 %v105_v24, %v102_v22 }
  0xe9   :  { %v1296_v23 = vpop.eup %1295 }
  0xea   :  { %v103_v25 = vmul.f32 %v1296_v23, %v1530_v1 }
  0xec   :  { %v1567_v27 = vmul.f32 %v105_v24, %v103_v25 }
  0xee   :  { %v108_v28 = vpack.c.bf16 %v1567_v27, %v1565_v26 }
  0xf0   :  { %1081 = vmatmul.mubr.msk.bf16.vlgmr.msra.gmra.mrb[0].mxu1 %vm88_vm0, %v108_v28 }
  0xf1   :  { %1147 = vmatprep.mubr.msk.bf16.mxu1 %vm1436_vm1, %v1434_v34 }
 0x1c3   :  { %v194_v31 = vpop.f32.mrb[0].mxu1 }
 0x1c4   :  { %v207_v32 = vmul.f32 %v203_v29, %v194_v31  ;;  %v196_v33 = vpop.f32.mrb[1].mxu1 }
 0x1c5   :  { %v208_v35 = vmul.f32 %v204_v30, %v196_v33  ;;  %v198_v36 = vpop.f32.mrb[2].mxu1 }
 0x1c6   :  { %213 = vrot.lane.b32.xlu1 %v207_v32, %s1426_s15  ;;  %v200_v38 = vpop.f32.mrb[3].mxu1  ;;  %v209_v40 = vmul.f32 %v205_v37, %v198_v36 }
 0x1c7   :  { %v1584_v39 = vpack.c.bf16 %v200_v38, %v196_v33  ;;  %223 = vrot.lane.b32.xlu0 %v208_v35, %s1435_s20  ;;  %v210_v42 = vmul.f32 %v206_v41, %v200_v38 }
 0x1ca   :  { %215 = vrot.lane.b32.xlu1 %v209_v40, %s1426_s15 }
 0x1ce   :  { %225 = vrot.lane.b32.xlu1 %v210_v42, %s1435_s20 }
 0x238   :  { %v214_v43 = vpop.permute.xlu1 %213 }
 0x239   :  { %v219_v45 = vadd.f32 %v214_v43, %v207_v32  ;;  %v224_v47 = vpop.permute.xlu0 %223 }
 0x23a   :  { %v229_v50 = vadd.f32 %v224_v47, %v208_v35 }
 0x23c   :  { %v216_v44 = vpop.permute.xlu1 %215 }
 0x23d   :  { %v220_v46 = vadd.f32 %v216_v44, %v209_v40 }
 0x23f   :  { %v233_v48 = vpack.c.bf16 %v220_v46, %v219_v45 }
 0x240   :  { %v226_v49 = vpop.permute.xlu1 %225 }
 0x241   :  { %v230_v51 = vadd.f32 %v226_v49, %v210_v42  ;;  %356 = vrot.lane.b32.xlu1 %v233_v48, %s1437_s2 }
 0x243   :  { %v234_v52 = vpack.c.bf16 %v230_v51, %v229_v50 }
 0x245   :  { %472 = vrot.lane.b32.xlu1 %v234_v52, %s1437_s2  ;;  %v241_v53 = vsel %vm236_vm2, %v234_v52, 0 }
 0x246   :  { %1146 = vmatpush3.bf16.xpose.msra.mxu1 %v241_v53  ;;  %1158 = vmatpush3.bf16.xpose.msra.mxu0 %v241_v53 }
 0x247   :  { %1169 = vmatprep.subr.bf16.mxu0 %v1434_v34  ;;  %1151 = vmatprep.subr.bf16.mxu1 %v1434_v34 }
 0x249   :  { %469 = vrot.lane.b32.xlu1 %v233_v48, %s1435_s20 }
 0x24d   :  { %591 = vrot.lane.b32.xlu1 %v233_v48, %s1438_s5  ;;  %1148 = vmatmul.mubr.msk.bf16.vlgmr.msra.gmra.mrb[4].mxu1 %vm236_vm2, %v233_v48 }
 0x24e   :  { %1153 = vmatprep.mubr.msk.bf16.mxu1 %vm1436_vm1, %v1434_v34 }
 0x2b3   :  { %v357_v54 = vpop.permute.xlu1 %356 }
 0x2b4   :  { %1160 = vmatmul.mubr.msk.bf16.vlgmr.msra.gmra.mrb[0].mxu0 %vm236_vm2, %v357_v54 }
 0x2b5   :  { %1171 = vmatprep.mubr.msk.bf16.mxu0 %vm1436_vm1, %v1434_v34 }
 0x2b7   :  { %v473_v55 = vpop.permute.xlu1 %472 }
 0x2b8   :  { %v478_v56 = vsel %vm236_vm2, %v473_v55, 0 }
 0x2b9   :  { %1170 = vmatpush3.bf16.xpose.msra.mxu0 %v478_v56 }
 0x2ba   :  { %1181 = vmatprep.subr.bf16.mxu0 %v1434_v34 }
 0x2bb   :  { %v470_v57 = vpop.permute.xlu1 %469 }
 0x2bf   :  { %v592_v58 = vpop.permute.xlu1 %591 }
 0x2c0   :  { %1172 = vmatmul.mubr.msk.bf16.vlgmr.msra.gmra.mrb[4].mxu0 %vm236_vm2, %v470_v57 }
 0x2c1   :  { %1182 = vmatpush3.bf16.xpose.msra.mxu0 %v478_v56  ;;  %1183 = vmatprep.mubr.msk.bf16.mxu0 %vm1436_vm1, %v1434_v34 }
 0x2c2   :  { %1193 = vmatprep.subr.bf16.mxu0 %v1434_v34 }
 0x2c8   :  { %1184 = vmatmul.mubr.msk.bf16.vlgmr.msra.gmra.mrb[8].mxu0 %vm236_vm2, %v592_v58 }
 0x2c9   :  { %1201 = vmatprep.mubr.msk.bf16.mxu0 %vm1436_vm1, %v1434_v34 }
 0x320   :  { %v277_v60 = vpop.f32.mrb[4].mxu1 }
 0x321   :  { %v278_v62 = vadd.f32 %v277_v60, %v231_v59  ;;  %v1149_v63 = vpop.f32.mrb[5].mxu1 }
 0x322   :  { %v280_v2 = vpop.f32.mrb[6].mxu1 }
 0x323   :  { %v281_v3 = vadd.f32 %v280_v2, %v232_v61  ;;  %v1150_v4 = vpop.f32.mrb[7].mxu1  ;;  %v284_v5 = vsel %vm236_vm2, %v278_v62, -inf }
 0x324   :  { %285 = vmax.xlane.f32.xlu1 %v284_v5 }
 0x325   :  { %v287_v6 = vsel %vm236_vm2, %v281_v3, -inf }
 0x326   :  { %288 = vmax.xlane.f32.xlu0 %v287_v6 }
 0x387   :  { %v395_v7 = vpop.f32.mrb[0].mxu0 }
 0x388   :  { %v396_v8 = vadd.f32 %v395_v7, %v231_v59  ;;  %v1161_v9 = vpop.f32.mrb[1].mxu0 }
 0x389   :  { %v398_v10 = vpop.f32.mrb[2].mxu0 }
 0x38a   :  { %v399_v12 = vadd.f32 %v398_v10, %v232_v61  ;;  %v1162_v13 = vpop.f32.mrb[3].mxu0  ;;  %v402_v14 = vsel %vm236_vm2, %v396_v8, -inf }
 0x38b   :  { %403 = vmax.xlane.f32.xlu0 %v402_v14 }
 0x38c   :  { %v405_v15 = vsel %vm236_vm2, %v399_v12, -inf }
 0x38d   :  { %406 = vmax.xlane.f32.xlu1 %v405_v15  ;;  %v1661_v15 = vadd.f32 %v1567_v27, %v1530_v1 }
 0x393   :  { %v514_v16 = vpop.f32.mrb[4].mxu0 }
 0x394   :  { %v515_v17 = vadd.f32 %v514_v16, %v231_v59  ;;  %v1173_v18 = vpop.f32.mrb[5].mxu0  ;;  %v1665_v16 = vadd.f32 %v1565_v26, %v1528_v0 }
 0x395   :  { %v517_v19 = vpop.f32.mrb[6].mxu0 }
 0x396   :  { %v518_v20 = vadd.f32 %v517_v19, %v232_v61  ;;  %v1174_v21 = vpop.f32.mrb[7].mxu0  ;;  %v521_v22 = vsel %vm236_vm2, %v515_v17, -inf  ;;  %v815_v18 = vmul.f32 %v1665_v16, %v1665_v16 }
 0x397   :  { %522 = vmax.xlane.f32.xlu0 %v521_v22 }
 0x398   :  { %v524_v23 = vsel %vm236_vm2, %v518_v20, -inf }
 0x399   :  { %525 = vmax.xlane.f32.xlu1 %v524_v23 }
 0x39b   :  { %v630_v24 = vpop.f32.mrb[8].mxu0 }
 0x39c   :  { %v631_v25 = vadd.f32 %v630_v24, %v231_v59  ;;  %v1185_v28 = vpop.f32.mrb[9].mxu0 }
 0x39d   :  { %v633_v29 = vpop.f32.mrb[10].mxu0 }
 0x39e   :  { %v634_v30 = vadd.f32 %v633_v29, %v232_v61  ;;  %v1186_v31 = vpop.f32.mrb[11].mxu0  ;;  %v637_v32 = vsel %vm236_vm2, %v631_v25, -inf }
 0x39f   :  { %638 = vmax.xlane.f32.xlu0 %v637_v32 }
 0x3a0   :  { %v640_v33 = vsel %vm236_vm2, %v634_v30, -inf }
 0x3a1   :  { %641 = vmax.xlane.f32.xlu1 %v640_v33 }
 0x3b1   :  { %v286_v35 = vpop.xlane.xlu1 %285 }
 0x3b2   :  { %v290_v36 = vsub.f32 %v278_v62, %v286_v35 }
 0x3b3   :  { %v289_v37 = vpop.xlane.xlu0 %288 }
 0x3b4   :  { %v292_v38 = vmul.f32 1.442695, %v290_v36  ;;  %v291_v40 = vsub.f32 %v281_v3, %v289_v37 }
 0x3b6   :  { %1297 = vpow2.f32 %v292_v38  ;;  %v294_v41 = vmul.f32 1.442695, %v291_v40 }
 0x3b8   :  { %1299 = vpow2.f32 %v294_v41 }
 0x3c0   :  { %v1626_v42 = vpop.eup %1297 }
 0x3c1   :  { %v296_v43 = vsel %vm236_vm2, %v1626_v42, 0.0 }
 0x3c2   :  { %v1630_v44 = vpop.eup %1299  ;;  %297 = vadd.xlane.f32.xlu0 %v296_v43 }
 0x3c3   :  { %v299_v45 = vsel %vm236_vm2, %v1630_v44, 0.0 }
 0x3c4   :  { %300 = vadd.xlane.f32.xlu1 %v299_v45  ;;  %v1271_v45 = vld [vmem:[#allocation7 + $0x4] ss:$8 sps:$4 sm:$0xff]  }
 0x418   :  { %v404_v46 = vpop.xlane.xlu0 %403 }
 0x419   :  { %v408_v47 = vsub.f32 %v396_v8, %v404_v46 }
 0x41a   :  { %v407_v48 = vpop.xlane.xlu1 %406 }
 0x41b   :  { %v410_v49 = vmul.f32 1.442695, %v408_v47  ;;  %v409_v50 = vsub.f32 %v399_v12, %v407_v48 }
 0x41d   :  { %1301 = vpow2.f32 %v410_v49  ;;  %v412_v51 = vmul.f32 1.442695, %v409_v50  ;;  %v1269_v50 = vld [vmem:[#allocation7] ss:$8 sps:$4 sm:$0xff]  }
 0x41f   :  { %1303 = vpow2.f32 %v412_v51 }
 0x424   :  { %v523_v52 = vpop.xlane.xlu0 %522 }
 0x425   :  { %v527_v53 = vsub.f32 %v515_v17, %v523_v52  ;;  %v816_v17 = vmul.f32 %v1661_v15, %v1661_v15  ;;  %v1274_v52 = vld [vmem:[#allocation7 + $0x14] ss:$8 sps:$4 sm:$0xff]  }
 0x426   :  { %v526_v54 = vpop.xlane.xlu1 %525 }
 0x427   :  { %v1634_v55 = vpop.eup %1301  ;;  %v529_v56 = vmul.f32 1.442695, %v527_v53  ;;  %v528_v57 = vsub.f32 %v518_v20, %v526_v54  ;;  %v820_v19 = vsel %vm88_vm0, %v816_v17, 0.0  ;;  %v817_v20 = vsel %vm88_vm0, %v815_v18, 0.0  ;;  %v1272_v53 = vld [vmem:[#allocation7 + $0x10] ss:$8 sps:$4 sm:$0xff]  }
 0x428   :  { %v414_v58 = vsel %vm236_vm2, %v1634_v55, 0.0  ;;  %v1277_v54 = vld [vmem:[#allocation7 + $0x24] ss:$8 sps:$4 sm:$0xff]  }
 0x429   :  { %v1638_v59 = vpop.eup %1303  ;;  %1305 = vpow2.f32 %v529_v56  ;;  %v531_v60 = vmul.f32 1.442695, %v528_v57  ;;  %415 = vadd.xlane.f32.xlu0 %v414_v58  ;;  %v1280_v56 = vld [vmem:[#allocation7 + $0x34] ss:$8 sps:$4 sm:$0xff]   ;;  %v1278_v57 = vld [vmem:[#allocation7 + $0x30] ss:$8 sps:$4 sm:$0xff]  }
 0x42a   :  { %v417_v61 = vsel %vm236_vm2, %v1638_v59, 0.0  ;;  %v1282_v18 = vld [vmem:[#allocation5 + $0x8] sm:$0xff]  }
 0x42b   :  { %1307 = vpow2.f32 %v531_v60  ;;  %418 = vadd.xlane.f32.xlu1 %v417_v61 }
 0x42c   :  { %v639_v62 = vpop.xlane.xlu0 %638 }
 0x42d   :  { %v643_v63 = vsub.f32 %v631_v25, %v639_v62 }
 0x42e   :  { %v642_v2 = vpop.xlane.xlu1 %641 }
 0x42f   :  { %v645_v3 = vmul.f32 1.442695, %v643_v63  ;;  %v644_v4 = vsub.f32 %v634_v30, %v642_v2 }
 0x431   :  { %1309 = vpow2.f32 %v645_v3  ;;  %v647_v5 = vmul.f32 1.442695, %v644_v4  ;;  %v832_v4 = vstv %s1095_s28 }
 0x433   :  { %v1642_v6 = vpop.eup %1305  ;;  %1311 = vpow2.f32 %v647_v5 }
 0x434   :  { %v533_v7 = vsel %vm236_vm2, %v1642_v6, 0.0 }
 0x435   :  { %v1308_v8 = vpop.eup %1307  ;;  %534 = vadd.xlane.f32.xlu0 %v533_v7 }
 0x436   :  { %v536_v9 = vsel %vm236_vm2, %v1308_v8, 0.0 }
 0x437   :  { %537 = vadd.xlane.f32.xlu1 %v536_v9 }
 0x43b   :  { %v1647_v10 = vpop.eup %1309 }
 0x43c   :  { %v649_v12 = vsel %vm236_vm2, %v1647_v10, 0.0 }
 0x43d   :  { %v1651_v13 = vpop.eup %1311  ;;  %650 = vadd.xlane.f32.xlu0 %v649_v12 }
 0x43e   :  { %v652_v14 = vsel %vm236_vm2, %v1651_v13, 0.0 }
 0x43f   :  { %653 = vadd.xlane.f32.xlu1 %v652_v14 }
 0x44f   :  { %v298_v21 = vpop.xlane.xlu0 %297 }
 0x450   :  { %544 = vrot.lane.b32.xlu1 %v1584_v39, %s1439_s1 }
 0x453   :  { %308 = vrot.lane.b32.xlu0 %v1584_v39, %s1426_s15  ;;  %v301_v39 = vpop.xlane.xlu1 %300 }
 0x454   :  { %1313 = vrcp.f32 %v301_v39  ;;  %v1283_v39 = vld [vmem:[#allocation5 + $0x10] sm:$0xff]  }
 0x455   :  { %1315 = vrcp.f32 %v298_v21 }
 0x45e   :  { %v1314_v26 = vpop.eup %1313 }
 0x45f   :  { %v1316_v23 = vpop.eup %1315  ;;  %v305_v24 = vmul.f32 %v1314_v26, %v1630_v44 }
 0x460   :  { %v304_v28 = vmul.f32 %v1316_v23, %v1626_v42 }
 0x462   :  { %v306_v30 = vpack.c.bf16 %v305_v24, %v304_v28 }
 0x472   :  { %821 = vadd.xlane.f32.xlu0 %v820_v19 }
 0x474   :  { %818 = vadd.xlane.f32.xlu1 %v817_v20 }
 0x4b6   :  { %v416_v1 = vpop.xlane.xlu0 %415 }
 0x4b8   :  { %v419_v27 = vpop.xlane.xlu1 %418 }
 0x4b9   :  { %1317 = vrcp.f32 %v419_v27 }
 0x4ba   :  { %1319 = vrcp.f32 %v416_v1 }
 0x4c2   :  { %v535_v0 = vpop.xlane.xlu0 %534 }
 0x4c3   :  { %v1318_v31 = vpop.eup %1317 }
 0x4c4   :  { %v538_v25 = vpop.xlane.xlu1 %537  ;;  %v1320_v32 = vpop.eup %1319  ;;  %v423_v33 = vmul.f32 %v1318_v31, %v1638_v59 }
 0x4c5   :  { %1321 = vrcp.f32 %v538_v25  ;;  %v422_v36 = vmul.f32 %v1320_v32, %v1634_v55  ;;  %v1275_v55 = vld [vmem:[#allocation7 + $0x20] ss:$8 sps:$4 sm:$0xff]  }
 0x4c6   :  { %1323 = vrcp.f32 %v535_v0  ;;  %v1284_v0 = vld [vmem:[#allocation5 + $0x18] sm:$0xff]  }
 0x4c7   :  { %v424_v37 = vpack.c.bf16 %v423_v33, %v422_v36 }
 0x4ca   :  { %v651_v22 = vpop.xlane.xlu0 %650 }
 0x4cc   :  { %v654_v35 = vpop.xlane.xlu1 %653 }
 0x4cd   :  { %1325 = vrcp.f32 %v654_v35 }
 0x4ce   :  { %v309_v29 = vpop.permute.xlu0 %308  ;;  %1327 = vrcp.f32 %v651_v22 }
 0x4cf   :  { %1152 = vmatpush3.bf16.msra.mxu1 %v309_v29  ;;  %v1322_v38 = vpop.eup %1321 }
 0x4d0   :  { %1163 = vmatprep.subr.bf16.mxu1 %v1434_v34  ;;  %v545_v40 = vpop.permute.xlu1 %544  ;;  %v1324_v41 = vpop.eup %1323  ;;  %v542_v42 = vmul.f32 %v1322_v38, %v1308_v8 }
 0x4d1   :  { %v541_v43 = vmul.f32 %v1324_v41, %v1642_v6 }
 0x4d2   :  { %1154 = vmatmul.mubr.msk.bf16.vlgmr.msra.gmra.mrb[8].mxu1 %vm236_vm2, %v306_v30 }
 0x4d3   :  { %1164 = vmatpush3.bf16.msra.mxu1 %v309_v29  ;;  %1165 = vmatprep.mubr.msk.bf16.mxu1 %vm1436_vm1, %v1434_v34  ;;  %v543_v44 = vpack.c.bf16 %v542_v42, %v541_v43 }
 0x4d4   :  { %1175 = vmatprep.subr.bf16.mxu1 %v1434_v34 }
 0x4d7   :  { %v1326_v46 = vpop.eup %1325 }
 0x4d8   :  { %v1328_v47 = vpop.eup %1327  ;;  %v658_v48 = vmul.f32 %v1326_v46, %v1651_v13  ;;  %v1281_v13 = vld [vmem:[#allocation5] sm:$0xff]  }
 0x4d9   :  { %v657_v49 = vmul.f32 %v1328_v47, %v1647_v10  ;;  %1194 = vmatpush3.bf16.msra.mxu0 %v1281_v13 }
 0x4da   :  { %1166 = vmatmul.mubr.msk.bf16.vlgmr.msra.gmra.mrb[12].mxu1 %vm236_vm2, %v424_v37  ;;  %1195 = vmatprep.subr.bf16.mxu0 %v1434_v34 }
 0x4db   :  { %1176 = vmatpush3.bf16.msra.mxu1 %v545_v40  ;;  %1177 = vmatprep.mubr.msk.bf16.mxu1 %vm1436_vm1, %v1434_v34  ;;  %v659_v51 = vpack.c.bf16 %v658_v48, %v657_v49 }
 0x4dc   :  { %1187 = vmatprep.subr.bf16.mxu1 %v1434_v34 }
 0x4dd   :  { %1196 = vmatpush3.bf16.msra.mxu0 %v1282_v18 }
 0x4de   :  { %1197 = vmatprep.subr.bf16.mxu0 %v1434_v34 }
 0x4e1   :  { %1198 = vmatpush3.bf16.msra.mxu0 %v1283_v39 }
 0x4e2   :  { %1178 = vmatmul.mubr.msk.bf16.vlgmr.msra.gmra.mrb[16].mxu1 %vm236_vm2, %v543_v44  ;;  %1199 = vmatprep.subr.bf16.mxu0 %v1434_v34 }
 0x4e3   :  { %1188 = vmatpush3.bf16.msra.mxu1 %v545_v40  ;;  %1189 = vmatprep.mubr.msk.bf16.mxu1 %vm1436_vm1, %v1434_v34 }
 0x4e4   :  { %887 = vmatprep.subr.bf16.mxu1 %v1271_v45 }
 0x4e5   :  { %1200 = vmatpush3.bf16.msra.mxu0 %v1284_v0 }
 0x4e6   :  { %1205 = vmatprep.subr.bf16.mxu0 %v1434_v34 }
 0x4ea   :  { %1190 = vmatmul.mubr.msk.bf16.vlgmr.msra.gmra.mrb[20].mxu1 %vm236_vm2, %v659_v51 }
 0x4eb   :  { %888 = vmatpush1.bf16.msra.mxu1 %v1269_v50  ;;  %919 = vmatprep.mubr.bf16.mxu1 %v1433_v11 }
 0x4ec   :  { %889 = vmatprep.subr.bf16.mxu1 %v1274_v52 }
 0x4ef   :  { %890 = vmatpush1.bf16.msra.mxu1 %v1272_v53 }
 0x4f0   :  { %891 = vmatprep.subr.bf16.mxu1 %v1277_v54 }
 0x4f3   :  { %892 = vmatpush1.bf16.msra.mxu1 %v1275_v55 }
 0x4f4   :  { %893 = vmatprep.subr.bf16.mxu1 %v1280_v56 }
 0x4f7   :  { %894 = vmatpush1.bf16.msra.mxu1 %v1278_v57 }
 0x4ff   :  { %v822_v58 = vpop.xlane.xlu0 %821 }
 0x500   :  { %v824_v59 = vmul.f32 0.015625, %v822_v58 }
 0x501   :  { %v819_v60 = vpop.xlane.xlu1 %818 }
 0x502   :  { %v826_v61 = vadd.f32 1e-06, %v824_v59  ;;  %v823_v62 = vmul.f32 0.015625, %v819_v60 }
 0x504   :  { %1329 = vrsqrt.f32 %v826_v61  ;;  %v825_v63 = vadd.f32 1e-06, %v823_v62 }
 0x506   :  { %1331 = vrsqrt.f32 %v825_v63 }
 0x50e   :  { %v1330_v11 = vpop.eup %1329 }
 0x50f   :  { %v830_v2 = vmul.f32 %v1330_v11, %v1661_v15 }
 0x510   :  { %v1332_v3 = vpop.eup %1331 }
 0x511   :  { %v829_v5 = vmul.f32 %v1332_v3, %v1665_v16  ;;  %v834_v7 = vmul.f32 %v832_v4, %v830_v2  ;;  %v1285_v3 = vld [vmem:[%s1762_s6] sm:$0xff]  }
 0x513   :  { %v833_v6 = vmul.f32 %v832_v4, %v829_v5  ;;  %v1286_v5 = vld [vmem:[%s1762_s6 + $0x8] sm:$0xff]  }
 0x515   :  { %v835_v8 = vpack.c.bf16 %v834_v7, %v833_v6  ;;  %v1287_v6 = vld [vmem:[%s1762_s6 + $0x10] sm:$0xff]   ;;  %v1288_v7 = vld [vmem:[%s1762_s6 + $0x18] sm:$0xff]  }
 0x517   :  { %1104 = vmatmul.mubr.msk.bf16.vlgmr.msra.gmra.mrb[24].mxu1 %vm88_vm0, %v835_v8  ;;  %v1289_v8 = vld [vmem:[%s1762_s6 + $0x20] sm:$0xff]  }
 0x5a5   :  { %v1697_v9 = vpop.f32.mrb[8].mxu1 }
 0x5a6   :  { %v1155_v10 = vpop.f32.mrb[9].mxu1 }
 0x5a7   :  { %v1699_v12 = vpop.f32.mrb[10].mxu1  ;;  %v1291_v10 = vld [vmem:[%s1762_s6 + $0x30] sm:$0xff]  }
 0x5a8   :  { %v1156_v14 = vpop.f32.mrb[11].mxu1 }
 0x5ad   :  { %v462_v17 = vpop.f32.mrb[12].mxu1 }
 0x5ae   :  { %v1167_v19 = vpop.f32.mrb[13].mxu1 }
 0x5af   :  { %v465_v20 = vpop.f32.mrb[14].mxu1 }
 0x5b0   :  { %v1242_v21 = vpack.i.bf16 %v465_v20, %v462_v17  ;;  %v1168_v1 = vpop.f32.mrb[15].mxu1 }
 0x5b2   :  { %1243 = vrot.lane.b32.xlu0 %v1242_v21, %s1440_s30 }
 0x5b5   :  { %v584_v27 = vpop.f32.mrb[16].mxu1 }
 0x5b6   :  { %v1179_v26 = vpop.f32.mrb[17].mxu1 }
 0x5b7   :  { %v587_v22 = vpop.f32.mrb[18].mxu1 }
 0x5b8   :  { %v1247_v23 = vpack.i.bf16 %v587_v22, %v584_v27  ;;  %v1180_v24 = vpop.f32.mrb[19].mxu1 }
 0x5ba   :  { %1248 = vrot.lane.b32.xlu1 %v1247_v23, %s1441_s9 }
 0x5bd   :  { %v697_v25 = vpop.f32.mrb[20].mxu1 }
 0x5be   :  { %v1191_v28 = vpop.f32.mrb[21].mxu1 }
 0x5bf   :  { %v700_v29 = vpop.f32.mrb[22].mxu1 }
 0x5c0   :  { %v1252_v30 = vpack.i.bf16 %v700_v29, %v697_v25  ;;  %v1192_v31 = vpop.f32.mrb[23].mxu1 }
 0x5c2   :  { %1253 = vrot.lane.b32.xlu1 %v1252_v30, %s1439_s1 }
 0x5ea   :  { %v921_v32 = vpop.f32.mrb[24].mxu1 }
 0x5eb   :  { %v1105_v33 = vmul.f32 -1.442695, %v921_v32  ;;  %v923_v35 = vpop.f32.mrb[25].mxu1 }
 0x5ec   :  { %v925_v36 = vpop.f32.mrb[26].mxu1 }
 0x5ed   :  { %1333 = vpow2.f32 %v1105_v33  ;;  %v1106_v37 = vmul.f32 -1.442695, %v925_v36  ;;  %v927_v38 = vpop.f32.mrb[27].mxu1 }
 0x5ef   :  { %1335 = vpow2.f32 %v1106_v37 }
 0x5f7   :  { %v1334_v40 = vpop.eup %1333 }
 0x5f8   :  { %v936_v41 = vadd.f32 1.0, %v1334_v40 }
 0x5f9   :  { %v1336_v42 = vpop.eup %1335 }
 0x5fa   :  { %1337 = vrcp.f32 %v936_v41  ;;  %v937_v43 = vadd.f32 1.0, %v1336_v42 }
 0x5fc   :  { %1339 = vrcp.f32 %v937_v43 }
 0x604   :  { %v1338_v44 = vpop.eup %1337 }
 0x605   :  { %v942_v45 = vmul.f32 %v1338_v44, %v921_v32 }
 0x606   :  { %v1340_v46 = vpop.eup %1339 }
 0x607   :  { %v944_v47 = vmul.f32 %v942_v45, %v923_v35  ;;  %v943_v48 = vmul.f32 %v1340_v46, %v925_v36 }
 0x609   :  { %v945_v49 = vmul.f32 %v943_v48, %v927_v38 }
 0x60b   :  { %v946_v50 = vpack.c.bf16 %v945_v49, %v944_v47 }
 0x624   :  { %v1244_v51 = vpop.permute.xlu0 %1243 }
 0x625   :  { %v1246_v53 = vunpack.i.h.bf16 %v1244_v51  ;;  %v1245_v54 = vunpack.i.l.bf16 %v1244_v51 }
 0x627   :  { %v729_v58 = vsel %vm236_vm2, %v1699_v12, %v1246_v53  ;;  %v728_v59 = vsel %vm236_vm2, %v1697_v9, %v1245_v54  ;;  %v1290_v9 = vld [vmem:[%s1762_s6 + $0x28] sm:$0xff]   ;;  %v1292_v12 = vld [vmem:[%s1762_s6 + $0x38] sm:$0xff]  }
 0x62c   :  { %v1249_v52 = vpop.permute.xlu1 %1248 }
 0x62d   :  { %v1251_v55 = vunpack.i.h.bf16 %v1249_v52  ;;  %v1250_v56 = vunpack.i.l.bf16 %v1249_v52 }
 0x62f   :  { %v732_v62 = vsel %vm730_vm3, %v729_v58, %v1251_v55  ;;  %v731_v63 = vsel %vm730_vm3, %v728_v59, %v1250_v56 }
 0x634   :  { %v1254_v57 = vpop.permute.xlu1 %1253 }
 0x635   :  { %v1256_v60 = vunpack.i.h.bf16 %v1254_v57  ;;  %v1255_v61 = vunpack.i.l.bf16 %v1254_v57 }
 0x637   :  { %v734_v11 = vsel %vm733_vm4, %v731_v63, %v1255_v61  ;;  %v735_v2 = vsel %vm733_vm4, %v732_v62, %v1256_v60 }
 0x638   :  { %v736_v4 = vpack.c.bf16 %v735_v2, %v734_v11 }
 0x63a   :  { %1202 = vmatmul.mubr.msk.bf16.vlgmr.msra.gmra.mrb[12].mxu0 %vm88_vm0, %v736_v4 }
 0x63b   :  { %1206 = vmatpush3.bf16.msra.mxu0 %v1285_v3  ;;  %1221 = vmatprep.mubr.msk.bf16.mxu0 %vm1436_vm1, %v1434_v34 }
 0x63c   :  { %1207 = vmatprep.subr.bf16.mxu0 %v1434_v34 }
 0x63f   :  { %1208 = vmatpush3.bf16.msra.mxu0 %v1286_v5 }
 0x640   :  { %1209 = vmatprep.subr.bf16.mxu0 %v1434_v34 }
 0x643   :  { %1210 = vmatpush3.bf16.msra.mxu0 %v1287_v6 }
 0x644   :  { %1211 = vmatprep.subr.bf16.mxu0 %v1434_v34 }
 0x647   :  { %1212 = vmatpush3.bf16.msra.mxu0 %v1288_v7 }
 0x648   :  { %1213 = vmatprep.subr.bf16.mxu0 %v1434_v34 }
 0x64b   :  { %1214 = vmatpush3.bf16.msra.mxu0 %v1289_v8 }
 0x64c   :  { %1215 = vmatprep.subr.bf16.mxu0 %v1434_v34 }
 0x64f   :  { %1216 = vmatpush3.bf16.msra.mxu0 %v1290_v9 }
 0x650   :  { %1217 = vmatprep.subr.bf16.mxu0 %v1434_v34 }
 0x653   :  { %1218 = vmatpush3.bf16.msra.mxu0 %v1291_v10 }
 0x654   :  { %1219 = vmatprep.subr.bf16.mxu0 %v1434_v34 }
 0x657   :  { %1220 = vmatpush3.bf16.msra.mxu0 %v1292_v12 }
 0x65a   :  { %1222 = vmatmul.mubr.bf16.vlgmr.msra.gmra.mrb[16].mxu0 %v946_v50 }
 0x70d   :  { %v806_v13 = vpop.f32.mrb[12].mxu0 }
 0x70e   :  { %1056 = vrot.lane.b32.xlu0 %v806_v13, %s1426_s15  ;;  %v1203_v14 = vpop.f32.mrb[13].mxu0 }
 0x70f   :  { %v809_v17 = vpop.f32.mrb[14].mxu0 }
 0x710   :  { %1058 = vrot.lane.b32.xlu1 %v809_v17, %s1426_s15  ;;  %v1204_v18 = vpop.f32.mrb[15].mxu0 }
 0x72d   :  { %v1045_v19 = vpop.f32.mrb[16].mxu0 }
 0x72e   :  { %v1223_v20 = vpop.f32.mrb[17].mxu0  ;;  %v1052_v1 = vadd.f32 %v1045_v19, %v1665_v16 }
 0x72f   :  { %v1048_v39 = vpop.f32.mrb[18].mxu0 }
 0x730   :  { %v1224_v21 = vpop.f32.mrb[19].mxu0  ;;  %v1053_v0 = vadd.f32 %v1048_v39, %v1661_v15 }
 0x780   :  { %v1057_v27 = vpop.permute.xlu0 %1056 }
 0x781   :  { %v1062_v34 = vsel %vm88_vm0, %v1052_v1, %v1057_v27 }
 0x782   :  { %1064 = vst [vmem:[%s1764_s8] sm:$0xff] %v1062_v34  ;;  %v1059_v26 = vpop.permute.xlu1 %1058 }
 0x783   :  { %v1063_v22 = vsel %vm88_vm0, %v1053_v0, %v1059_v26 }
 0x784   :  { %1065 = vst [vmem:[%s1764_s8 + $0x8] sm:$0xff] %v1063_v22 }
 0x785   :  { %1070 = vsyncpa [#allocation3], 1 }
 0x786   :  { %1071 = vsyncpa [#allocation6], 1 }
 0x787   :  { %1072 = vsyncpa [#allocation4], 1 }

</bundles_post_ra>
